<compile_context>
chip_gen: v7x
topology: tpu7x:2x2x1
jax: 0.10.0
libtpu: 0.0.40
codegen_flags: <defaults>
</compile_context>

<pallas_src>
import functools

import jax
import jax.numpy as jnp
from jax.experimental import pallas as pl
from jax.experimental.pallas import tpu as pltpu


def _gcn_kernel(x_ref, adj_ref, w_ref, b_ref, out_ref, *, adj_first):
    # x_ref:   (S, N, Din)    adj_ref: (S, N, N)
    # w_ref:   (S, Din, DoutP) b_ref:  (1, 1, DoutP)
    x = x_ref[...]
    adj = adj_ref[...]
    w = w_ref[...]

    if adj_first:
        # (adj @ x) @ w : the big N x N matmul contracts against Din (< Dout).
        ax = jnp.einsum("sij,sjd->sid", adj, x,
                        preferred_element_type=jnp.float32)
        h = jnp.einsum("sid,sde->sie", ax, w,
                       preferred_element_type=jnp.float32)
    else:
        # adj @ (x @ w) : cheaper when Dout < Din.
        xw = jnp.einsum("snd,sde->sne", x, w,
                        preferred_element_type=jnp.float32)
        h = jnp.einsum("sij,sje->sie", adj, xw,
                       preferred_element_type=jnp.float32)

    h = jnp.maximum(h, 0.0)        # ReLU
    h = h + b_ref[...]             # bias AFTER activation (module semantics)
    out_ref[...] = h.astype(out_ref.dtype)


def _round_up(x, m):
    return (x + m - 1) // m * m


def _pick_seq_block(seq, n, din, dout_p, dtype_bytes=4, vmem_budget=24 << 20):
    """Largest seq block that fits a conservative VMEM budget, keeps >=2 grid
    steps when possible (v7x megacore), and divides seq evenly."""
    per_seq = (n * din + n * n + din * dout_p + n * dout_p) * dtype_bytes * 2
    s_blk = max(1, min(seq, 8, vmem_budget // max(per_seq, 1)))
    if seq >= 2:
        s_blk = min(s_blk, max(1, seq // 2))
    while seq % s_blk:
        s_blk -= 1
    return s_blk


def graph_convolution_forward(x, x_adj, weight, bias):
    """Pallas implementation of GraphConvolution.forward((x, x_adj))."""
    seq, n, din = x.shape
    dout = weight.shape[-1]

    # Lane-dense output: pad Dout to a multiple of 128.  Zero-padded weight /
    # bias columns produce exactly 0 after relu+bias, so slicing them off is
    # bit-exact.
    dout_p = _round_up(dout, 128)
    if dout_p != dout:
        weight_p = jnp.pad(weight, ((0, 0), (0, 0), (0, dout_p - dout)))
        bias_p = jnp.pad(bias, ((0, dout_p - dout),))
    else:
        weight_p, bias_p = weight, bias
    bias3d = bias_p.reshape(1, 1, dout_p)

    s_blk = _pick_seq_block(seq, n, din, dout_p)
    grid = (seq // s_blk,)

    adj_first = din < dout  # reassociate: (adj@x)@w is cheaper when Din < Dout

    flops = 2 * seq * (n * n * (din if adj_first else dout)
                       + n * din * dout_p)
    bytes_accessed = 4 * seq * (n * din + n * n + din * dout_p + n * dout_p)

    kernel = functools.partial(_gcn_kernel, adj_first=adj_first)

    out_p = pl.pallas_call(
        kernel,
        out_shape=jax.ShapeDtypeStruct((seq, n, dout_p), x.dtype),
        grid_spec=pltpu.PrefetchScalarGridSpec(
            num_scalar_prefetch=0,
            grid=grid,
            in_specs=[
                pl.BlockSpec((s_blk, n, din), lambda s: (s, 0, 0)),     # x
                pl.BlockSpec((s_blk, n, n), lambda s: (s, 0, 0)),       # x_adj
                pl.BlockSpec((s_blk, din, dout_p), lambda s: (s, 0, 0)),  # weight
                pl.BlockSpec((1, 1, dout_p), lambda s: (0, 0, 0)),      # bias (shared)
            ],
            out_specs=pl.BlockSpec((s_blk, n, dout_p), lambda s: (s, 0, 0)),
        ),
        compiler_params=pltpu.CompilerParams(
            dimension_semantics=("parallel",),
        ),
        cost_estimate=pl.CostEstimate(
            flops=flops, transcendentals=0, bytes_accessed=bytes_accessed),
    )(x, x_adj, weight_p, bias3d)

    out = out_p[..., :dout] if dout_p != dout else out_p
    return out, x_adj


def reference_forward(x, x_adj, weight, bias):
    xw = jnp.matmul(x, weight)
    h = jnp.matmul(x_adj, xw)
    h = jnp.maximum(h, 0.0)
    h = h + bias
    return h, x_adj


if __name__ == "__main__":
    # Small deterministic shapes consistent with the module's __init__.
    seq, n_nodes, input_dim, output_dim = 2, 16, 8, 32

    key = jax.random.PRNGKey(0)
    kx, kadj, kw = jax.random.split(key, 3)

    x = jax.random.normal(kx, (seq, n_nodes, input_dim), dtype=jnp.float32)
    x_adj = jax.random.normal(kadj, (seq, n_nodes, n_nodes), dtype=jnp.float32)

    # Parameters: weight ~ randn(seq, input_dim, output_dim), bias = zeros(output_dim)
    weight = jax.random.normal(kw, (seq, input_dim, output_dim), dtype=jnp.float32)
    bias = jnp.zeros((output_dim,), dtype=jnp.float32)

    out, adj_out = graph_convolution_forward(x, x_adj, weight, bias)
    out = jax.block_until_ready(out)

    ref_out, _ = reference_forward(x, x_adj, weight, bias)
    assert out.shape == (seq, n_nodes, output_dim)
    # Matmul reassociation changes f32 rounding order slightly; tolerance
    # reflects that while remaining tight.
    assert jnp.allclose(out, ref_out, atol=1e-4, rtol=1e-5)
    assert jnp.array_equal(adj_out, x_adj)

    print("KERNEL_OK")
</pallas_src>

<mosaic_0001>
module attributes {stable_mosaic.version = 11 : i64} {
  func.func @_gcn_kernel(%arg0: i32, %arg1: memref<1x16x8xf32, #tpu.memory_space<vmem>>, %arg2: memref<1x16x16xf32, #tpu.memory_space<vmem>>, %arg3: memref<1x8x128xf32, #tpu.memory_space<vmem>>, %arg4: memref<1x1x128xf32, #tpu.memory_space<vmem>>, %arg5: memref<1x16x128xf32, #tpu.memory_space<vmem>>) attributes {dimension_semantics = [#tpu.dimension_semantics<parallel>], iteration_bounds = array<i64: 2>, scalar_prefetch = 0 : i64, scratch_operands = 0 : i64, tpu.core_type = #tpu.core_type<tc>, window_params = [{transform_indices = @transform_0, window_bounds = array<i64: 1, 16, 8>}, {transform_indices = @transform_1, window_bounds = array<i64: 1, 16, 16>}, {transform_indices = @transform_2, window_bounds = array<i64: 1, 8, 128>}, {pipeline_mode = #tpu.pipeline_mode<synchronous>, transform_indices = @transform_3, window_bounds = array<i64: 1, 1, 128>}, {transform_indices = @transform_4, window_bounds = array<i64: 1, 16, 128>}]} {
    %c0 = arith.constant 0 : index
    %c0_0 = arith.constant 0 : index
    %c0_1 = arith.constant 0 : index
    %0 = vector.load %arg1[%c0, %c0_0, %c0_1] : memref<1x16x8xf32, #tpu.memory_space<vmem>>, vector<1x16x8xf32>
    %c0_2 = arith.constant 0 : index
    %c0_3 = arith.constant 0 : index
    %c0_4 = arith.constant 0 : index
    %1 = vector.load %arg2[%c0_2, %c0_3, %c0_4] : memref<1x16x16xf32, #tpu.memory_space<vmem>>, vector<1x16x16xf32>
    %c0_5 = arith.constant 0 : index
    %c0_6 = arith.constant 0 : index
    %c0_7 = arith.constant 0 : index
    %2 = vector.load %arg3[%c0_5, %c0_6, %c0_7] : memref<1x8x128xf32, #tpu.memory_space<vmem>>, vector<1x8x128xf32>
    "tpu.trace_start"() <{level = 10 : i32, message = "sij,sjd->sid"}> : () -> ()
    %cst = arith.constant dense<0.000000e+00> : vector<1x16x8xf32>
    %3 = tpu.matmul %1, %0, %cst {dimension_numbers = #tpu.dot_dimension_numbers<[2], [1], [1], [2], [0, 0, 0, 1, 1, 2], [0], [0]>} : vector<1x16x16xf32>, vector<1x16x8xf32>, vector<1x16x8xf32> -> vector<1x16x8xf32>
    "tpu.trace_stop"() : () -> ()
    "tpu.trace_start"() <{level = 10 : i32, message = "sid,sde->sie"}> : () -> ()
    %cst_8 = arith.constant dense<0.000000e+00> : vector<1x16x128xf32>
    %4 = tpu.matmul %3, %2, %cst_8 {dimension_numbers = #tpu.dot_dimension_numbers<[2], [1], [1], [2], [0, 0, 0, 1, 1, 2], [0], [0]>} : vector<1x16x8xf32>, vector<1x8x128xf32>, vector<1x16x128xf32> -> vector<1x16x128xf32>
    "tpu.trace_stop"() : () -> ()
    %cst_9 = arith.constant 0.000000e+00 : f32
    %5 = vector.broadcast %cst_9 : f32 to vector<1x16x128xf32>
    %6 = arith.maximumf %4, %5 : vector<1x16x128xf32>
    %c0_10 = arith.constant 0 : index
    %c0_11 = arith.constant 0 : index
    %c0_12 = arith.constant 0 : index
    %7 = vector.load %arg4[%c0_10, %c0_11, %c0_12] : memref<1x1x128xf32, #tpu.memory_space<vmem>>, vector<1x1x128xf32>
    %8 = vector.broadcast %7 : vector<1x1x128xf32> to vector<1x16x128xf32>
    %9 = arith.addf %6, %8 : vector<1x16x128xf32>
    %c0_13 = arith.constant 0 : index
    %c0_14 = arith.constant 0 : index
    %c0_15 = arith.constant 0 : index
    %10 = vector.load %arg5[%c0_13, %c0_14, %c0_15] : memref<1x16x128xf32, #tpu.memory_space<vmem>>, vector<1x16x128xf32>
    tpu.vector_store %arg5[%c0_13, %c0_14, %c0_15], %9 {strides = array<i32>} : memref<1x16x128xf32, #tpu.memory_space<vmem>>, vector<1x16x128xf32>,
    return
  }
  func.func @transform_0(%arg0: i32) -> (i32, i32, i32) {
    %c0_i32 = arith.constant 0 : i32
    %c0_i32_0 = arith.constant 0 : i32
    %c0_i32_1 = arith.constant 0 : i32
    return %arg0, %c0_i32, %c0_i32_0 : i32, i32, i32
  }
  func.func @transform_1(%arg0: i32) -> (i32, i32, i32) {
    %c0_i32 = arith.constant 0 : i32
    %c0_i32_0 = arith.constant 0 : i32
    %c0_i32_1 = arith.constant 0 : i32
    return %arg0, %c0_i32, %c0_i32_0 : i32, i32, i32
  }
  func.func @transform_2(%arg0: i32) -> (i32, i32, i32) {
    %c0_i32 = arith.constant 0 : i32
    %c0_i32_0 = arith.constant 0 : i32
    %c0_i32_1 = arith.constant 0 : i32
    return %arg0, %c0_i32, %c0_i32_0 : i32, i32, i32
  }
  func.func @transform_3(%arg0: i32) -> (i32, i32, i32) {
    %c0_i32 = arith.constant 0 : i32
    %c0_i32_0 = arith.constant 0 : i32
    %c0_i32_1 = arith.constant 0 : i32
    %c0_i32_2 = arith.constant 0 : i32
    return %c0_i32, %c0_i32_0, %c0_i32_1 : i32, i32, i32
  }
  func.func @transform_4(%arg0: i32) -> (i32, i32, i32) {
    %c0_i32 = arith.constant 0 : i32
    %c0_i32_0 = arith.constant 0 : i32
    %c0_i32_1 = arith.constant 0 : i32
    return %arg0, %c0_i32, %c0_i32_0 : i32, i32, i32
  }
}

</mosaic_0001>

<bundles_post_ra>
// kernel: tpu_custom_call.1
= control target key start
LH: loop header
LB: loop body
LE: loop exit
PB: predicated region body
PF: predicated region fallthrough
CT: control target
= control target key end

     0   :  { %9 = vsyncpa [#allocation3], 0  ;;  %s806_s0 = inlined_call_operand.vmem [shape: f32[2,16,8], index: 0, kind: input, shape index: {}]   ;;  %s807_s1 = inlined_call_operand.vmem [shape: f32[2,16,16], index: 1, kind: input, shape index: {}]   ;;  %s808_s2 = inlined_call_operand.vmem [shape: f32[2,8,128], index: 2, kind: input, shape index: {}]   ;;  %s809_s3 = inlined_call_operand.vmem [shape: f32[1,1,128], index: 3, kind: input, shape index: {}]   ;;  %s810_s4 = inlined_call_operand.hbm [shape: f32[2,16,128], index: 4, kind: output, shape index: {}]  }
   0x1   :  { %11 = vsyncpa [#allocation3 + $0x1], 0  ;;  %s694_s15 = smov 0   ;;  %s696_s16 = smov 0  }
   0x2   :  { %s698_s17 = smov 0   ;;  %s700_s18 = smov 0  }
   0x3 LB: > { %s715_s19 = sadd.s32 4294967295, %s664_s18   ;;  %s515_s20 = sadd.s32 4294967294, %s664_s18   ;;  %s664_s18 = sphi %s700_s18, %s816_s18   ;;  %s660_s17 = sphi %s698_s17, %s815_s17   ;;  %s656_s16 = sphi %s696_s16, %s814_s16   ;;  %s652_s15 = sphi %s694_s15, %s813_s15  }
   0x4   : > { %s719_s21 = sadd.s32 1, %s664_s18   ;;  %s123_s22 = sadd.s32 1, %s660_s17 }
   0x5   : > { %s120_s23 = ssub.s32 %s664_s18, %s719_s21  ;;  %p133_p0 = scmp.ne.s32.totalorder %s660_s17, %s656_s16 }
   0x6   : > { %p121_p1 = scmp.eq.s32.totalorder %s120_s23, 0  ;;  %p134_p2 = scmp.eq.s32.totalorder %s715_s19, 1 }
   0x7   : > { %p139_p3 = scmp.ne.s32.totalorder %s656_s16, %s652_s15  ;;  %p140_p4 = scmp.eq.s32.totalorder %s515_s20, 1 }
   0x8   : > { %s730_s24 = scalar_select %p121_p1, %s660_s17, %s123_s22  }
   0x9   : > { %p732_p5 = por %p134_p2, %p133_p0  ;;  %p736_p6 = por %p140_p4, %p139_p3 }
   0xa   : > { %p518_p7 = scmp.ge.s32.totalorder %s664_s18, 1  ;;  %p184_p8 = scmp.lt.s32.totalorder %s664_s18, 3 }
   0xc   : > { %p185_p9 = pnand %p518_p7, %p184_p8 }
   0xd   : > { %p219_p10 = scmp.lt.s32.totalorder (!%p185_p9), %s715_s19, 1  ;;  %vm238_vm0 = vcmask (!%p185_p9), 130048   ;;  %vm320_vm1 = vcmask (!%p185_p9), 64512   ;;  %s216_s13 = sand.u32 (!%p185_p9), 1, %s656_s16   ;;  %v529_v9 = vld [vmem:[%s809_s3] ss:$0 sm:$0xff] (!%p185_p9) }
   0xe   : > { %188 = sbr.rel (%p185_p9) target bundleno = 478 (0x1de), region = 36  ;;  %s519_s14 = sshll.u32 (!%p185_p9), %s216_s13, 4 }
   0xf   : > { %s218_s23 = scalar_lea.vmem (!%p185_p9), [#allocation2], %s519_s14  ;;  %s765_s6 = scalar_lea.sflag (!%p185_p9), [#allocation3], %s216_s13 }
  0x10   : > { %s666_s7 = smov (!%p185_p9), [#allocation2]  }
  0x15   : > { %s220_s27 = scalar_select %p219_p10, %s715_s19, 1 }
  0x17   : > { %s535_s28 = sshll.u32 %s220_s27, 4  ;;  %s524_s9 = sshll.u32 %s220_s27, 3 }
  0x18   : > { %s223_s5 = scalar_lea.vmem %s806_s0, %s535_s28  ;;  %s228_s8 = scalar_lea.vmem %s807_s1, %s535_s28 }
  0x19   : > { %v233_v0 = vld [vmem:[%s223_s5] sm:$0xff]  ;;  %v234_v1 = vld [vmem:[%s223_s5 + $0x8] sm:$0xff]  ;;  %s232_s12 = scalar_lea.vmem %s808_s2, %s524_s9  ;;  %s429_s27 = sshll.u32 %s218_s23, 4  ;;  %s758_s27 = int_to_ptr.vmem [resolvable:$true] %s429_s27 }
  0x1a   : > { %v235_v2 = vld [vmem:[%s228_s8] sm:$0xff]  ;;  %v557_v3 = vpack.c.bf16 %v234_v1, %v233_v0  ;;  %v236_v4 = vld [vmem:[%s228_s8 + $0x8] sm:$0xff]  ;;  %s537_s28 = sshll.u32 %s715_s19, 8  ;;  %s602_s19 = scalar_lea.vmem %s758_s27, 256 }
  0x1b   : > { %549 = vmatprep.mubr.msk.f32.mxu0 %vm238_vm0, %v235_v2  ;;  %v237_v5 = vld [vmem:[%s232_s12] sm:$0xff]  ;;  %s763_s5 = scalar_lea.hbm %s810_s4, %s537_s28  ;;  %p603_p11 = scmp.ne.s32.totalorder %s758_s27, %s602_s19 }
  0x1c   : > { %558 = vmatprep.subr.bf16.mxu0 %v557_v3  ;;  %552 = vmatprep.subr.mxu1 %v237_v5  ;;  %s606_s8 = sshll.u32 %s666_s7, 4  ;;  %s607_s8 = int_to_ptr.vmem [resolvable:$false] %s606_s8 }
  0x1d   : > { %560 = vmatpush3.bf16.msra.mxu0 %v557_v3  ;;  %553 = vmatpush3.msra.mxu1 %v237_v5  ;;  %p604_p12 = pnand %p603_p11, %p732_p5  ;;  %s608_s9 = scalar_lea.vmem %s607_s8, 512 }
  0x1e   : > { %p609_p0 = scmp.lt.s32.totalorder %s758_s27, %s607_s8  ;;  %p610_p1 = scmp.lt.s32.totalorder %s608_s9, %s602_s19 }
  0x1f   : > { %p605_p13 = pneg %p604_p12 }
  0x20   : > { %550 = vmatmul.mubr.msk.f32.vlgmr.msra.gmra.mrb[0].mxu0 %vm238_vm0, %v236_v4  ;;  %p611_p2 = por %p610_p1, %p609_p0 }
  0x22   : > { %p612_p3 = pnand %p611_p2, %p605_p13 }
  0xf3   : > { %v551_v6 = vpop.f32.mrb[0].mxu0 }
  0xf4   : > { %v311_v7 = vpop.f32.mrb[1].mxu0 }
  0xf5   : > { %554 = vmatprep.mubr.msk.f32.mxu1 %vm320_vm1, %v311_v7 }
  0xf6   : > { %555 = vmatmul.mubr.msk.f32.vlgmr.msra.gmra.mrb[0].mxu1 %vm320_vm1, %v551_v6 }
 0x1c9   : > { %v556_v8 = vpop.f32.mrb[0].mxu1 }
 0x1ca   : > { %v403_v10 = vmax.f32 %v556_v8, 0.0  ;;  %v393_v11 = vpop.f32.mrb[1].mxu1 }
 0x1cb   : > { %v402_v12 = vmax.f32 %v393_v11, 0.0 }
 0x1cc   : > { %v412_v13 = vadd.f32 %v529_v9, %v403_v10 }
 0x1cd   : > { %v411_v14 = vadd.f32 %v529_v9, %v402_v12 }
 0x1ce   : > { %414 = vst [vmem:[%s218_s23 + $0x8] sm:$0xff] %v412_v13 }
 0x1cf   : > { %413 = vst [vmem:[%s218_s23] sm:$0xff] %v411_v14 }
 0x1d0   : > { %615 = shalt.err (!%p612_p3)
}
 0x1d1   : > { %s616_s10 = scalar_lea.hbm %s763_s5, 256  ;;  %s620_s13 = scalar_lea.hbm %s810_s4, 512 }
 0x1d2   : > { %p617_p4 = scmp.ne.s32.totalorder %s763_s5, %s616_s10  ;;  %p621_p9 = scmp.lt.u32.totalorder %s763_s5, %s810_s4 }
 0x1d3   : > { %p622_p10 = scmp.lt.u32.totalorder %s620_s13, %s616_s10  ;;  %p624_p12 = scmp.lt.u32.totalorder %s616_s10, %s763_s5 }
 0x1d4   : > { %p618_p7 = pnand %p617_p4, %p732_p5 }
 0x1d5   : > { %p623_p11 = por %p622_p10, %p621_p9 }
 0x1d6   : > { %p619_p8 = pneg %p618_p7 }
 0x1d7   : > { %p625_p13 = por %p624_p12, %p623_p11 }
 0x1d9   : > { %p626_p0 = pnand %p625_p13, %p619_p8 }
 0x1db   : > { %629 = shalt.err (!%p626_p0)
}
 0x1dc   : > { %s667_s22 = smov 128   ;;  %s668_s23 = smov 8  }
 0x1dd   : > { %561 = dma.vmem_to_hbm [thread:$0]  (%p732_p5), %s758_s27, 256, %s763_s5, %s765_s6, %s667_s22, %s667_s22, %s668_s23  }
 0x1de PF: > { %p567_p1 = scmp.ge.s32.totalorder %s664_s18, 2  ;;  %s444_s28 = sand.u32 1, %s652_s15  }
 0x1df   : > { %s445_s29 = scalar_lea.sflag [#allocation3], %s444_s28 }
 0x1e0   : > { %p564_p2 = pnand %p567_p1, %p736_p6 }
 0x1e2   : > { %647 = dma.done.wait (!%p564_p2), %s445_s29, 256  }
 0x1e3   : > { %649 = vsyncadd (!%p564_p2), %s445_s29, 4294967040  ;;  %p14_p3 = scmp.ge.s32.totalorder %s719_s21, 4   ;;  %s813_s15 = smov %s656_s16 }
 0x1e4   : > { %s814_s16 = smov %s660_s17  ;;  %s815_s17 = smov %s730_s24 }
 0x1e5   : > { %s816_s18 = smov %s719_s21  ;;  %16 = sbr.rel (!%p14_p3) target bundleno = 3 (0x3), region = 77 }
 0x1ec   :  { %450 = vsyncpa [#allocation3], 1 }
 0x1ed   :  { %452 = vsyncpa [#allocation3 + $0x1], 1 }

</bundles_post_ra>
